<compile_context>
chip_gen: v6e
topology: v6e:2x2x1
jax: 0.10.0
libtpu: 0.0.40
codegen_flags: <defaults>
</compile_context>

<pallas_src>
import functools

import numpy as np
import jax
import jax.numpy as jnp
from jax.experimental import pallas as pl
from jax.experimental.pallas import tpu as pltpu


# ----------------------------------------------------------------------------
# Static matrix construction (trace-time, numpy)
# ----------------------------------------------------------------------------
def _pool_matrix(in_size: int, out_size: int) -> np.ndarray:
    """AdaptiveAvgPool1d matrix (out_size, in_size), PyTorch floor/ceil bounds."""
    m = np.zeros((out_size, in_size), np.float32)
    for i in range(out_size):
        s = (i * in_size) // out_size
        e = -((-(i + 1) * in_size) // out_size)  # ceil
        m[i, s:e] = 1.0 / (e - s)
    return m


def _interp_matrix(out_size: int, in_size: int) -> np.ndarray:
    """Linear interpolation matrix (out_size, in_size), align_corners=True."""
    m = np.zeros((out_size, in_size), np.float32)
    if in_size == 1 or out_size == 1:
        m[:, 0] = 1.0
        return m
    scale = (in_size - 1) / (out_size - 1)
    for o in range(out_size):
        c = o * scale
        i0 = min(int(np.floor(c)), in_size - 1)
        i1 = min(i0 + 1, in_size - 1)
        f = c - i0
        m[o, i0] += 1.0 - f
        m[o, i1] += f
    return m


# ----------------------------------------------------------------------------
# Fused PPM Pallas kernel (whole batch, channel-major, no grid)
# ----------------------------------------------------------------------------
def _ppm_kernel(x_ref, pt_ref, wbd_ref, mt_ref, ut_ref, o_ref):
    """Fused pool -> 1x1 conv -> relu -> bilinear upsample -> channel concat.

    x_ref  : (N*C, H*W)      channel-major input (free reshape of NCHW)
    pt_ref : (H*W, Qp)       stacked pooling Kronecker matrices (transposed, padded)
    wbd_ref: (N*BR, N*C)     block-diagonal transposed 1x1-conv weights
    mt_ref : (N*BR, Qp)      per-bin 0/1 block mask, tiled over batch
    ut_ref : (Qp, H*W)       stacked bilinear upsampling Kronecker matrices
    o_ref  : (N, Ctot, H*W)  concatenated channel-major output, Ctot = C + BR
    """
    N, Ctot, HW = o_ref.shape
    C = x_ref.shape[0] // N
    BR = Ctot - C

    x = x_ref[...]                                               # (N*C, HW)

    # Adaptive average pooling for all bins & all batch rows in one matmul.
    pooled = jnp.dot(x, pt_ref[...],
                     preferred_element_type=jnp.float32)         # (N*C, Qp)

    # All bins' 1x1 convs as one block-diagonal matmul, ReLU, then block-mask
    # so each pooled pixel only keeps its own bin's reduction channels.
    red = jnp.maximum(
        jnp.dot(wbd_ref[...], pooled, preferred_element_type=jnp.float32),
        0.0)                                                     # (N*BR, Qp)
    red = red * mt_ref[...]

    # Bilinear (align_corners=True) upsample of every bin.
    ups = jnp.dot(red, ut_ref[...],
                  preferred_element_type=jnp.float32)            # (N*BR, HW)

    # Channel concat via two direct slice stores (no concatenate, no splice).
    o_ref[:, :C, :] = x.reshape(N, C, HW).astype(o_ref.dtype)
    o_ref[:, C:, :] = ups.reshape(N, BR, HW).astype(o_ref.dtype)


def ppm_forward_nchw(x_nchw, weights, *, bins):
    """PyTorch-layout PPM forward.

    x_nchw : (N, C, H, W); weights: tuple of (C, R) per bin.
    Returns (N, C + len(bins)*R, H, W).
    """
    N, C, H, W = x_nchw.shape
    R = weights[0].shape[1]
    B = len(bins)
    BR = B * R
    Ctot = C + BR
    HW = H * W
    Q = sum(b * b for b in bins)
    Qp = ((Q + 7) // 8) * 8          # pad to sublane multiple (e.g. 30 -> 32)

    # --- trace-time constants (numpy) -------------------------------------
    p_blocks, u_blocks = [], []
    mask_np = np.zeros((BR, Qp), np.float32)
    off = 0
    for k, b in enumerate(bins):
        ph = _pool_matrix(H, b)            # (b, H)
        pw = _pool_matrix(W, b)            # (b, W)
        uh = _interp_matrix(H, b)          # (H, b)
        uw = _interp_matrix(W, b)          # (W, b)
        p_blocks.append(np.kron(ph, pw))   # (b*b, H*W)
        u_blocks.append(np.kron(uh, uw))   # (H*W, b*b)
        mask_np[k * R:(k + 1) * R, off:off + b * b] = 1.0
        off += b * b

    pt_np = np.zeros((HW, Qp), np.float32)                 # pooling, transposed
    pt_np[:, :Q] = np.concatenate(p_blocks, axis=0).T
    ut_np = np.zeros((Qp, HW), np.float32)                 # upsample, transposed
    ut_np[:Q, :] = np.concatenate(u_blocks, axis=1).T
    mt_np = np.tile(mask_np, (N, 1))                       # (N*BR, Qp)

    pt = jnp.asarray(pt_np)
    ut = jnp.asarray(ut_np)
    mt = jnp.asarray(mt_np)

    # Block-diagonal transposed conv weights -> batch folded into matmul M dim.
    w_all = jnp.concatenate(list(weights), axis=1)          # (C, BR)
    wbd = jnp.kron(jnp.eye(N, dtype=w_all.dtype), w_all.T)  # (N*BR, N*C)

    # Free reshape of NCHW (no transpose, no extra HBM traffic).
    x_flat = x_nchw.reshape(N * C, HW)

    vmem = pl.BlockSpec(memory_space=pltpu.MemorySpace.VMEM)
    out = pl.pallas_call(
        _ppm_kernel,
        out_shape=jax.ShapeDtypeStruct((N, Ctot, HW), x_nchw.dtype),
        in_specs=[vmem, vmem, vmem, vmem, vmem],
        out_specs=vmem,
    )(x_flat, pt, wbd, mt, ut)

    # Free reshape back to NCHW.
    return out.reshape(N, Ctot, H, W)


# ----------------------------------------------------------------------------
# Plain-JAX reference (independent path: loop pooling + gather bilinear)
# ----------------------------------------------------------------------------
def _adaptive_avg_pool_nhwc(x, b):
    N, H, W, C = x.shape
    rows = []
    for i in range(b):
        hs, he = (i * H) // b, -((-(i + 1) * H) // b)
        cols = []
        for j in range(b):
            ws, we = (j * W) // b, -((-(j + 1) * W) // b)
            cols.append(jnp.mean(x[:, hs:he, ws:we, :], axis=(1, 2)))
        rows.append(jnp.stack(cols, axis=1))
    return jnp.stack(rows, axis=1)


def _lin_idx_w(out_size, in_size):
    if in_size == 1 or out_size == 1:
        i0 = jnp.zeros((out_size,), jnp.int32)
        return i0, i0, jnp.zeros((out_size,), jnp.float32)
    coords = jnp.arange(out_size, dtype=jnp.float32) * (in_size - 1) / (out_size - 1)
    i0 = jnp.clip(jnp.floor(coords).astype(jnp.int32), 0, in_size - 1)
    i1 = jnp.clip(i0 + 1, 0, in_size - 1)
    return i0, i1, coords - i0.astype(jnp.float32)


def _bilinear_resize(x, out_h, out_w):
    N, H, W, C = x.shape
    h0, h1, wh = _lin_idx_w(out_h, H)
    w0, w1, ww = _lin_idx_w(out_w, W)
    xh = (jnp.take(x, h0, axis=1) * (1.0 - wh)[None, :, None, None]
          + jnp.take(x, h1, axis=1) * wh[None, :, None, None])
    return (jnp.take(xh, w0, axis=2) * (1.0 - ww)[None, None, :, None]
            + jnp.take(xh, w1, axis=2) * ww[None, None, :, None])


def ppm_reference_nchw(x_nchw, weights, bins):
    x = jnp.transpose(x_nchw, (0, 2, 3, 1))
    N, H, W, C = x.shape
    outs = [x]
    for b, wmat in zip(bins, weights):
        pooled = _adaptive_avg_pool_nhwc(x, b)
        red = jnp.maximum(jnp.einsum('nijc,cr->nijr', pooled, wmat), 0.0)
        outs.append(_bilinear_resize(red, H, W))
    return jnp.transpose(jnp.concatenate(outs, axis=-1), (0, 3, 1, 2))


# ----------------------------------------------------------------------------
if __name__ == "__main__":
    key = jax.random.PRNGKey(0)
    kx, kw = jax.random.split(key)

    N, C, H, W = 2, 32, 16, 16
    R = 8
    bins = (1, 2, 3, 4)

    x_nchw = jax.random.normal(kx, (N, C, H, W), jnp.float32)
    wkeys = jax.random.split(kw, len(bins))
    weights = tuple((2.0 / C) ** 0.5 * jax.random.normal(k, (C, R), jnp.float32)
                    for k in wkeys)

    fwd = jax.jit(functools.partial(ppm_forward_nchw, bins=bins))
    out = jax.block_until_ready(fwd(x_nchw, weights))

    assert out.shape == (N, C + len(bins) * R, H, W), out.shape
    assert bool(jnp.all(jnp.isfinite(out)))

    # Parity checks against the independent plain-JAX reference.
    ref = ppm_reference_nchw(x_nchw, weights, bins)
    passthrough_err = float(jnp.max(jnp.abs(out[:, :C] - x_nchw)))
    assert passthrough_err < 1e-6, passthrough_err
    err = float(jnp.max(jnp.abs(out - ref)))
    assert err < 5e-2, err

    print("KERNEL_OK")
</pallas_src>

<mosaic_0001>
module attributes {stable_mosaic.version = 11 : i64} {
  func.func @_ppm_kernel(%arg0: memref<64x256xf32, #tpu.memory_space<vmem>>, %arg1: memref<256x32xf32, #tpu.memory_space<vmem>>, %arg2: memref<64x64xf32, #tpu.memory_space<vmem>>, %arg3: memref<64x32xf32, #tpu.memory_space<vmem>>, %arg4: memref<32x256xf32, #tpu.memory_space<vmem>>, %arg5: memref<2x64x256xf32, #tpu.memory_space<vmem>>) attributes {dimension_semantics = [], scalar_prefetch = 0 : i64, scratch_operands = 0 : i64, tpu.core_type = #tpu.core_type<tc>} {
    %c0 = arith.constant 0 : index
    %c0_0 = arith.constant 0 : index
    %0 = vector.load %arg0[%c0, %c0_0] : memref<64x256xf32, #tpu.memory_space<vmem>>, vector<64x256xf32>
    %c0_1 = arith.constant 0 : index
    %c0_2 = arith.constant 0 : index
    %1 = vector.load %arg1[%c0_1, %c0_2] : memref<256x32xf32, #tpu.memory_space<vmem>>, vector<256x32xf32>
    %cst = arith.constant dense<0.000000e+00> : vector<64x32xf32>
    %2 = tpu.matmul %0, %1, %cst {dimension_numbers = #tpu.dot_dimension_numbers<[1], [0], [0], [1], [0, 0, 1, 1], [], []>} : vector<64x256xf32>, vector<256x32xf32>, vector<64x32xf32> -> vector<64x32xf32>
    %c0_3 = arith.constant 0 : index
    %c0_4 = arith.constant 0 : index
    %3 = vector.load %arg2[%c0_3, %c0_4] : memref<64x64xf32, #tpu.memory_space<vmem>>, vector<64x64xf32>
    %cst_5 = arith.constant dense<0.000000e+00> : vector<64x32xf32>
    %4 = tpu.matmul %3, %2, %cst_5 {dimension_numbers = #tpu.dot_dimension_numbers<[1], [0], [0], [1], [0, 0, 1, 1], [], []>} : vector<64x64xf32>, vector<64x32xf32>, vector<64x32xf32> -> vector<64x32xf32>
    %cst_6 = arith.constant 0.000000e+00 : f32
    %5 = vector.broadcast %cst_6 : f32 to vector<64x32xf32>
    %6 = arith.maximumf %4, %5 : vector<64x32xf32>
    %c0_7 = arith.constant 0 : index
    %c0_8 = arith.constant 0 : index
    %7 = vector.load %arg3[%c0_7, %c0_8] : memref<64x32xf32, #tpu.memory_space<vmem>>, vector<64x32xf32>
    %8 = arith.mulf %6, %7 : vector<64x32xf32>
    %c0_9 = arith.constant 0 : index
    %c0_10 = arith.constant 0 : index
    %9 = vector.load %arg4[%c0_9, %c0_10] : memref<32x256xf32, #tpu.memory_space<vmem>>, vector<32x256xf32>
    %cst_11 = arith.constant dense<0.000000e+00> : vector<64x256xf32>
    %10 = tpu.matmul %8, %9, %cst_11 {dimension_numbers = #tpu.dot_dimension_numbers<[1], [0], [0], [1], [0, 0, 1, 1], [], []>} : vector<64x32xf32>, vector<32x256xf32>, vector<64x256xf32> -> vector<64x256xf32>
    %11 = vector.shape_cast %0 : vector<64x256xf32> to vector<2x32x256xf32>
    %c0_12 = arith.constant 0 : index
    %c0_13 = arith.constant 0 : index
    %c0_14 = arith.constant 0 : index
    %12 = vector.load %arg5[%c0_12, %c0_13, %c0_14] : memref<2x64x256xf32, #tpu.memory_space<vmem>>, vector<2x32x256xf32>
    tpu.vector_store %arg5[%c0_12, %c0_13, %c0_14], %11 {strides = array<i32>} : memref<2x64x256xf32, #tpu.memory_space<vmem>>, vector<2x32x256xf32>,
    %13 = vector.shape_cast %10 : vector<64x256xf32> to vector<2x32x256xf32>
    %c0_15 = arith.constant 0 : index
    %c32 = arith.constant 32 : index
    %c0_16 = arith.constant 0 : index
    %14 = vector.load %arg5[%c0_15, %c32, %c0_16] : memref<2x64x256xf32, #tpu.memory_space<vmem>>, vector<2x32x256xf32>
    tpu.vector_store %arg5[%c0_15, %c32, %c0_16], %13 {strides = array<i32>} : memref<2x64x256xf32, #tpu.memory_space<vmem>>, vector<2x32x256xf32>,
    return
  }
}

</mosaic_0001>

<bundles_post_ra>
// kernel: ppm_forward_nchw.1
= control target key start
LH: loop header
LB: loop body
LE: loop exit
PB: predicated region body
PF: predicated region fallthrough
CT: control target
= control target key end

     0   :  { %vm181_vm0 = vcmask 523264   ;;  %vm343_vm1 = vcmask 261120   ;;  %s1005_s1 = inlined_call_operand.vmem [shape: f32[256,32], index: 1, kind: input, shape index: {}]   ;;  %s1006_s0 = inlined_call_operand.vmem [shape: f32[64,256], index: 0, kind: input, shape index: {}]   ;;  %s1007_s5 = inlined_call_operand.vmem [shape: f32[2,64,256], index: 5, kind: output, shape index: {}]   ;;  %s1008_s2 = inlined_call_operand.vmem [shape: f32[64,64], index: 2, kind: input, shape index: {}]   ;;  %s1009_s4 = inlined_call_operand.vmem [shape: f32[32,256], index: 4, kind: input, shape index: {}]   ;;  %s1010_s3 = inlined_call_operand.vmem [shape: f32[64,32], index: 3, kind: input, shape index: {}]  }
   0x1   :  { %v67_v0 = vld [vmem:[%s1005_s1 + $0xf8] sm:$0xff]  ;;  %v66_v2 = vld [vmem:[%s1005_s1 + $0xf0] sm:$0xff]  ;;  %v65_v4 = vld [vmem:[%s1005_s1 + $0xe8] sm:$0xff] }
   0x2   :  { %v51_v1 = vld [vmem:[%s1005_s1 + $0x78] sm:$0xff]  ;;  %533 = vmatprep.subr.mxu0 %v67_v0  ;;  %v50_v3 = vld [vmem:[%s1005_s1 + $0x70] sm:$0xff]  ;;  %v49_v5 = vld [vmem:[%s1005_s1 + $0x68] sm:$0xff] }
   0x3   :  { %534 = vmatpush3.msra.mxu0 %v51_v1  ;;  %v64_v6 = vld [vmem:[%s1005_s1 + $0xe0] sm:$0xff]  ;;  %v63_v8 = vld [vmem:[%s1005_s1 + $0xd8] sm:$0xff]  ;;  %v62_v10 = vld [vmem:[%s1005_s1 + $0xd0] sm:$0xff] }
   0x4   :  { %535 = vmatprep.subr.mxu0 %v66_v2  ;;  %v48_v7 = vld [vmem:[%s1005_s1 + $0x60] sm:$0xff]  ;;  %v47_v9 = vld [vmem:[%s1005_s1 + $0x58] sm:$0xff]  ;;  %v46_v11 = vld [vmem:[%s1005_s1 + $0x50] sm:$0xff] }
   0x5   :  { %536 = vmatpush3.msra.mxu0 %v50_v3  ;;  %v61_v12 = vld [vmem:[%s1005_s1 + $0xc8] sm:$0xff]  ;;  %v60_v14 = vld [vmem:[%s1005_s1 + $0xc0] sm:$0xff]  ;;  %v727_v18 = vld [vmem:[%s1006_s0 + $0x18] sm:$0xff] }
   0x6   :  { %537 = vmatprep.subr.mxu0 %v65_v4  ;;  %v45_v13 = vld [vmem:[%s1005_s1 + $0x48] sm:$0xff]  ;;  %v44_v16 = vld [vmem:[%s1005_s1 + $0x40] sm:$0xff]  ;;  %v732_v19 = vld [vmem:[%s1006_s0 + $0x10] sm:$0xff]  ;;  %484 = vst [vmem:[%s1007_s5 + $0x18] sm:$0xff] %v727_v18 }
   0x7   :  { %538 = vmatpush3.msra.mxu0 %v49_v5  ;;  %v21_v15 = vld [vmem:[%s1006_s0 + $0x8] sm:$0xff]  ;;  %v722_v17 = vld [vmem:[%s1006_s0] sm:$0xff]  ;;  %v59_v20 = vld [vmem:[%s1005_s1 + $0xb8] sm:$0xff]  ;;  %483 = vst [vmem:[%s1007_s5 + $0x10] sm:$0xff] %v732_v19 }
   0x8   :  { %539 = vmatprep.subr.mxu0 %v64_v6  ;;  %132 = vmatprep.mubr.f32.mxu0 %v21_v15  ;;  %482 = vst [vmem:[%s1007_s5 + $0x8] sm:$0xff] %v21_v15  ;;  %481 = vst [vmem:[%s1007_s5] sm:$0xff] %v722_v17  ;;  %v25_v21 = vld [vmem:[%s1006_s0 + $0x28] sm:$0xff]  ;;  %v24_v22 = vld [vmem:[%s1006_s0 + $0x20] sm:$0xff] }
   0x9   :  { %540 = vmatpush3.msra.mxu0 %v48_v7  ;;  %v27_v23 = vld [vmem:[%s1006_s0 + $0x38] sm:$0xff]  ;;  %486 = vst [vmem:[%s1007_s5 + $0x28] sm:$0xff] %v25_v21  ;;  %485 = vst [vmem:[%s1007_s5 + $0x20] sm:$0xff] %v24_v22  ;;  %v26_v25 = vld [vmem:[%s1006_s0 + $0x30] sm:$0xff] }
   0xa   :  { %541 = vmatprep.subr.mxu0 %v63_v8  ;;  %v43_v24 = vld [vmem:[%s1005_s1 + $0x38] sm:$0xff]  ;;  %488 = vst [vmem:[%s1007_s5 + $0x38] sm:$0xff] %v27_v23  ;;  %v29_v26 = vld [vmem:[%s1006_s0 + $0x48] sm:$0xff]  ;;  %v28_v27 = vld [vmem:[%s1006_s0 + $0x40] sm:$0xff] }
   0xb   :  { %542 = vmatpush3.msra.mxu0 %v47_v9  ;;  %487 = vst [vmem:[%s1007_s5 + $0x30] sm:$0xff] %v26_v25  ;;  %490 = vst [vmem:[%s1007_s5 + $0x88] sm:$0xff] %v29_v26  ;;  %v31_v28 = vld [vmem:[%s1006_s0 + $0x58] sm:$0xff]  ;;  %v30_v29 = vld [vmem:[%s1006_s0 + $0x50] sm:$0xff] }
   0xc   :  { %543 = vmatprep.subr.mxu0 %v62_v10  ;;  %489 = vst [vmem:[%s1007_s5 + $0x80] sm:$0xff] %v28_v27  ;;  %v33_v30 = vld [vmem:[%s1006_s0 + $0x68] sm:$0xff]  ;;  %492 = vst [vmem:[%s1007_s5 + $0x98] sm:$0xff] %v31_v28  ;;  %v32_v31 = vld [vmem:[%s1006_s0 + $0x60] sm:$0xff] }
   0xd   :  { %544 = vmatpush3.msra.mxu0 %v46_v11  ;;  %491 = vst [vmem:[%s1007_s5 + $0x90] sm:$0xff] %v30_v29  ;;  %494 = vst [vmem:[%s1007_s5 + $0xa8] sm:$0xff] %v33_v30  ;;  %v35_v32 = vld [vmem:[%s1006_s0 + $0x78] sm:$0xff]  ;;  %v34_v33 = vld [vmem:[%s1006_s0 + $0x70] sm:$0xff] }
   0xe   :  { %545 = vmatprep.subr.mxu0 %v61_v12  ;;  %v58_v34 = vld [vmem:[%s1005_s1 + $0xb0] sm:$0xff]  ;;  %493 = vst [vmem:[%s1007_s5 + $0xa0] sm:$0xff] %v32_v31  ;;  %496 = vst [vmem:[%s1007_s5 + $0xb8] sm:$0xff] %v35_v32  ;;  %v57_v36 = vld [vmem:[%s1005_s1 + $0xa8] sm:$0xff] }
   0xf   :  { %546 = vmatpush3.msra.mxu0 %v45_v13  ;;  %495 = vst [vmem:[%s1007_s5 + $0xb0] sm:$0xff] %v34_v33  ;;  %v42_v35 = vld [vmem:[%s1005_s1 + $0x30] sm:$0xff]  ;;  %v41_v37 = vld [vmem:[%s1005_s1 + $0x28] sm:$0xff]  ;;  %v56_v38 = vld [vmem:[%s1005_s1 + $0xa0] sm:$0xff] }
  0x10   :  { %547 = vmatprep.subr.mxu0 %v60_v14  ;;  %v40_v39 = vld [vmem:[%s1005_s1 + $0x20] sm:$0xff]  ;;  %v55_v40 = vld [vmem:[%s1005_s1 + $0x98] sm:$0xff]  ;;  %v54_v42 = vld [vmem:[%s1005_s1 + $0x90] sm:$0xff] }
  0x11   :  { %548 = vmatpush3.msra.mxu0 %v44_v16  ;;  %v39_v41 = vld [vmem:[%s1005_s1 + $0x18] sm:$0xff]  ;;  %v38_v43 = vld [vmem:[%s1005_s1 + $0x10] sm:$0xff]  ;;  %v53_v44 = vld [vmem:[%s1005_s1 + $0x88] sm:$0xff] }
  0x12   :  { %549 = vmatprep.subr.mxu0 %v59_v20  ;;  %v37_v45 = vld [vmem:[%s1005_s1 + $0x8] sm:$0xff]  ;;  %v52_v46 = vld [vmem:[%s1005_s1 + $0x80] sm:$0xff]  ;;  %v342_v10 = vld [vmem:[%s1009_s4 + $0x38] sm:$0xff] }
  0x13   :  { %550 = vmatpush3.msra.mxu0 %v43_v24  ;;  %v36_v47 = vld [vmem:[%s1005_s1] sm:$0xff]  ;;  %v174_v9 = vld [vmem:[%s1008_s2 + $0x8] sm:$0xff]  ;;  %v175_v11 = vld [vmem:[%s1008_s2 + $0x10] sm:$0xff]  ;;  %v634_v24 = vmov 0.0  }
  0x14   :  { %551 = vmatprep.subr.mxu0 %v58_v34  ;;  %v173_v48 = vld [vmem:[%s1008_s2] sm:$0xff]  ;;  %v341_v12 = vld [vmem:[%s1009_s4 + $0x30] sm:$0xff]  ;;  %v340_v13 = vld [vmem:[%s1009_s4 + $0x28] sm:$0xff] }
  0x15   :  { %552 = vmatpush3.msra.mxu0 %v42_v35  ;;  %621 = vmatprep.mubr.msk.f32.mxu1 %vm181_vm0, %v173_v48  ;;  %v339_v14 = vld [vmem:[%s1009_s4 + $0x20] sm:$0xff]  ;;  %v176_v15 = vld [vmem:[%s1008_s2 + $0x18] sm:$0xff]  ;;  %v179_v20 = vld [vmem:[%s1008_s2 + $0x30] sm:$0xff] }
  0x16   :  { %553 = vmatprep.subr.mxu0 %v57_v36  ;;  %v338_v16 = vld [vmem:[%s1009_s4 + $0x18] sm:$0xff]  ;;  %v321_v36 = vld [vmem:[%s1010_s3 + $0x10] sm:$0xff]  ;;  %v324_v48 = vld [vmem:[%s1010_s3 + $0x28] sm:$0xff] }
  0x17   :  { %554 = vmatpush3.msra.mxu0 %v41_v37 }
  0x18   :  { %555 = vmatprep.subr.mxu0 %v56_v38 }
  0x19   :  { %556 = vmatpush3.msra.mxu0 %v40_v39 }
  0x1a   :  { %557 = vmatprep.subr.mxu0 %v55_v40  ;;  %v322_v40 = vld [vmem:[%s1010_s3 + $0x18] sm:$0xff] }
  0x1b   :  { %558 = vmatpush3.msra.mxu0 %v39_v41 }
  0x1c   :  { %559 = vmatprep.subr.mxu0 %v54_v42 }
  0x1d   :  { %560 = vmatpush3.msra.mxu0 %v38_v43 }
  0x1e   :  { %561 = vmatprep.subr.mxu0 %v53_v44  ;;  %v323_v44 = vld [vmem:[%s1010_s3 + $0x20] sm:$0xff] }
  0x1f   :  { %562 = vmatpush3.msra.mxu0 %v37_v45 }
  0x20   :  { %563 = vmatprep.subr.mxu0 %v52_v46 }
  0x21   :  { %564 = vmatpush3.msra.mxu0 %v36_v47 }
  0x22   :  { %133 = vmatmul.mubr.f32.vlgmr.msra.gmra.mxu0 %v722_v17  ;;  %v177_v17 = vld [vmem:[%s1008_s2 + $0x20] sm:$0xff] }
  0x23   :  { %137 = vmatprep.mubr.f32.mxu0 %v727_v18  ;;  %v337_v18 = vld [vmem:[%s1009_s4 + $0x10] sm:$0xff] }
  0x26   :  { %138 = vmatmul.mubr.f32.gmra.mxu0 %v732_v19  ;;  %v178_v19 = vld [vmem:[%s1008_s2 + $0x28] sm:$0xff] }
  0x27   :  { %142 = vmatprep.mubr.f32.mxu0 %v25_v21  ;;  %v180_v21 = vld [vmem:[%s1008_s2 + $0x38] sm:$0xff] }
  0x2a   :  { %143 = vmatmul.mubr.f32.gmra.mxu0 %v24_v22  ;;  %v336_v22 = vld [vmem:[%s1009_s4 + $0x8] sm:$0xff] }
  0x2b   :  { %147 = vmatprep.mubr.f32.mxu0 %v27_v23  ;;  %v335_v23 = vld [vmem:[%s1009_s4] sm:$0xff] }
  0x2e   :  { %148 = vmatmul.mubr.f32.gmra.mxu0 %v26_v25 }
  0x2f   :  { %152 = vmatprep.mubr.f32.mxu0 %v29_v26 }
  0x32   :  { %153 = vmatmul.mubr.f32.gmra.mxu0 %v28_v27  ;;  %v319_v27 = vld [vmem:[%s1010_s3] sm:$0xff] }
  0x33   :  { %157 = vmatprep.mubr.f32.mxu0 %v31_v28 }
  0x36   :  { %158 = vmatmul.mubr.f32.gmra.mxu0 %v30_v29 }
  0x37   :  { %162 = vmatprep.mubr.f32.mxu0 %v33_v30 }
  0x3a   :  { %163 = vmatmul.mubr.f32.gmra.mxu0 %v32_v31 }
  0x3b   :  { %167 = vmatprep.mubr.f32.mxu0 %v35_v32  ;;  %v320_v32 = vld [vmem:[%s1010_s3 + $0x8] sm:$0xff] }
  0x3e   :  { %168 = vmatmul.mubr.f32.gmra.mxu0 %v34_v33 }
  0xe2   :  { %v565_v49 = vpop.f32.mrf.mxu0 }
  0xe4   :  { %v566_v50 = vpop.f32.mrf.mxu0 }
  0xe5   :  { %v567_v8 = vadd.f32 %v566_v50, %v565_v49 }
  0xe6   :  { %v568_v51 = vpop.f32.mrf.mxu0 }
  0xe8   :  { %v569_v52 = vpop.f32.mrf.mxu0 }
  0xe9   :  { %v570_v7 = vadd.f32 %v569_v52, %v568_v51  ;;  %v325_v52 = vld [vmem:[%s1010_s3 + $0x30] sm:$0xff] }
  0xea   :  { %v571_v53 = vpop.f32.mrf.mxu0 }
  0xec   :  { %v572_v54 = vpop.f32.mrf.mxu0 }
  0xed   :  { %v573_v6 = vadd.f32 %v572_v54, %v571_v53 }
  0xee   :  { %v574_v55 = vpop.f32.mrf.mxu0 }
  0xf0   :  { %v575_v56 = vpop.f32.mrf.mxu0 }
  0xf1   :  { %v576_v5 = vadd.f32 %v575_v56, %v574_v55  ;;  %v326_v55 = vld [vmem:[%s1010_s3 + $0x38] sm:$0xff] }
  0xf2   :  { %v577_v57 = vpop.f32.mrf.mxu0 }
  0xf4   :  { %v578_v58 = vpop.f32.mrf.mxu0 }
  0xf5   :  { %v579_v4 = vadd.f32 %v578_v58, %v577_v57 }
  0xf6   :  { %v580_v59 = vpop.f32.mrf.mxu0 }
  0xf8   :  { %v581_v60 = vpop.f32.mrf.mxu0 }
  0xf9   :  { %v582_v3 = vadd.f32 %v581_v60, %v580_v59 }
  0xfa   :  { %v583_v61 = vpop.f32.mrf.mxu0 }
  0xfc   :  { %v584_v62 = vpop.f32.mrf.mxu0 }
  0xfd   :  { %v585_v2 = vadd.f32 %v584_v62, %v583_v61 }
  0xfe   :  { %v586_v63 = vpop.f32.mrf.mxu0 }
 0x100   :  { %v587_v0 = vpop.f32.mrf.mxu0 }
 0x101   :  { %v588_v1 = vadd.f32 %v587_v0, %v586_v63 }
 0x103   :  { %605 = vmatprep.subr.mxu1 %v588_v1 }
 0x104   :  { %606 = vmatpush3.msra.mxu1 %v588_v1 }
 0x105   :  { %607 = vmatprep.subr.mxu1 %v585_v2 }
 0x106   :  { %608 = vmatpush3.msra.mxu1 %v585_v2 }
 0x107   :  { %609 = vmatprep.subr.mxu1 %v582_v3 }
 0x108   :  { %610 = vmatpush3.msra.mxu1 %v582_v3 }
 0x109   :  { %611 = vmatprep.subr.mxu1 %v579_v4 }
 0x10a   :  { %612 = vmatpush3.msra.mxu1 %v579_v4 }
 0x10b   :  { %613 = vmatprep.subr.mxu1 %v576_v5 }
 0x10c   :  { %614 = vmatpush3.msra.mxu1 %v576_v5 }
 0x10d   :  { %615 = vmatprep.subr.mxu1 %v573_v6 }
 0x10e   :  { %616 = vmatpush3.msra.mxu1 %v573_v6 }
 0x10f   :  { %617 = vmatprep.subr.mxu1 %v570_v7 }
 0x110   :  { %618 = vmatpush3.msra.mxu1 %v570_v7 }
 0x111   :  { %619 = vmatprep.subr.mxu1 %v567_v8 }
 0x112   :  { %620 = vmatpush3.msra.mxu1 %v567_v8 }
 0x113   :  { %622 = vmatmul.mubr.msk.f32.vlgmr.msra.gmra.mxu1 %vm181_vm0, %v174_v9  ;;  %392 = vmatprep.subr.mxu1 %v342_v10 }
 0x114   :  { %624 = vmatprep.mubr.msk.f32.mxu1 %vm181_vm0, %v175_v11  ;;  %393 = vmatpush1.msra.mxu1 %v341_v12 }
 0x115   :  { %394 = vmatprep.subr.mxu1 %v340_v13 }
 0x116   :  { %395 = vmatpush1.msra.mxu1 %v339_v14 }
 0x117   :  { %625 = vmatmul.mubr.msk.f32.gmra.mxu1 %vm181_vm0, %v176_v15  ;;  %396 = vmatprep.subr.mxu1 %v338_v16 }
 0x118   :  { %627 = vmatprep.mubr.msk.f32.mxu1 %vm181_vm0, %v177_v17  ;;  %397 = vmatpush1.msra.mxu1 %v337_v18 }
 0x119   :  { %398 = vmatprep.subr.mxu1 %v336_v22 }
 0x11a   :  { %399 = vmatpush1.msra.mxu1 %v335_v23 }
 0x11b   :  { %628 = vmatmul.mubr.msk.f32.gmra.mxu1 %vm181_vm0, %v178_v19 }
 0x11c   :  { %630 = vmatprep.mubr.msk.f32.mxu1 %vm181_vm0, %v179_v20 }
 0x11f   :  { %631 = vmatmul.mubr.msk.f32.gmra.mxu1 %vm181_vm0, %v180_v21 }
 0x120   :  { %432 = vmatprep.mubr.f32.mxu1 %v634_v24 }
 0x1d3   :  { %v623_v25 = vpop.f32.mrf.mxu1 }
 0x1d4   :  { %v312_v30 = vmax.f32 %v623_v25, 0.0 }
 0x1d5   :  { %v272_v26 = vpop.f32.mrf.mxu1 }
 0x1d6   :  { %v311_v28 = vmax.f32 %v272_v26, 0.0  ;;  %v328_v34 = vmul.f32 %v320_v32, %v312_v30 }
 0x1d7   :  { %v626_v29 = vpop.f32.mrf.mxu1 }
 0x1d8   :  { %v327_v31 = vmul.f32 %v319_v27, %v311_v28  ;;  %v314_v38 = vmax.f32 %v626_v29, 0.0 }
 0x1d9   :  { %v282_v33 = vpop.f32.mrf.mxu1 }
 0x1da   :  { %525 = vmatmul.mubr.msk.f32.vlgmr.msra.gmra.mxu1 %vm343_vm1, %v327_v31  ;;  %v313_v35 = vmax.f32 %v282_v33, 0.0  ;;  %v330_v42 = vmul.f32 %v322_v40, %v314_v38 }
 0x1db   :  { %438 = vmatprep.mubr.f32.mxu1 %v634_v24  ;;  %v629_v37 = vpop.f32.mrf.mxu1 }
 0x1dc   :  { %v329_v39 = vmul.f32 %v321_v36, %v313_v35  ;;  %v316_v46 = vmax.f32 %v629_v37, 0.0 }
 0x1dd   :  { %v292_v41 = vpop.f32.mrf.mxu1 }
 0x1de   :  { %526 = vmatmul.mubr.msk.f32.gmra.mxu1 %vm343_vm1, %v328_v34  ;;  %v315_v43 = vmax.f32 %v292_v41, 0.0  ;;  %v332_v50 = vmul.f32 %v324_v48, %v316_v46 }
 0x1df   :  { %444 = vmatprep.mubr.f32.mxu1 %v634_v24  ;;  %v632_v45 = vpop.f32.mrf.mxu1 }
 0x1e0   :  { %v331_v47 = vmul.f32 %v323_v44, %v315_v43  ;;  %v318_v53 = vmax.f32 %v632_v45, 0.0 }
 0x1e1   :  { %v302_v49 = vpop.f32.mrf.mxu1 }
 0x1e2   :  { %527 = vmatmul.mubr.msk.f32.gmra.mxu1 %vm343_vm1, %v329_v39  ;;  %v317_v51 = vmax.f32 %v302_v49, 0.0  ;;  %v334_v56 = vmul.f32 %v326_v55, %v318_v53 }
 0x1e3   :  { %450 = vmatprep.mubr.f32.mxu1 %v634_v24 }
 0x1e4   :  { %v333_v54 = vmul.f32 %v325_v52, %v317_v51 }
 0x1e6   :  { %528 = vmatmul.mubr.msk.f32.gmra.mxu1 %vm343_vm1, %v330_v42 }
 0x1e7   :  { %456 = vmatprep.mubr.f32.mxu1 %v634_v24 }
 0x1ea   :  { %529 = vmatmul.mubr.msk.f32.gmra.mxu1 %vm343_vm1, %v331_v47 }
 0x1eb   :  { %462 = vmatprep.mubr.f32.mxu1 %v634_v24 }
 0x1ee   :  { %530 = vmatmul.mubr.msk.f32.gmra.mxu1 %vm343_vm1, %v332_v50 }
 0x1ef   :  { %468 = vmatprep.mubr.f32.mxu1 %v634_v24 }
 0x1f2   :  { %531 = vmatmul.mubr.msk.f32.gmra.mxu1 %vm343_vm1, %v333_v54 }
 0x1f3   :  { %474 = vmatprep.mubr.f32.mxu1 %v634_v24 }
 0x1f6   :  { %532 = vmatmul.mubr.msk.f32.gmra.mxu1 %vm343_vm1, %v334_v56 }
 0x29a   :  { %v434_v57 = vpop.f32.mrf.mxu1 }
 0x29b   :  { %497 = vst [vmem:[%s1007_s5 + $0x40] sm:$0xff] %v434_v57 }
 0x29c   :  { %v436_v58 = vpop.f32.mrf.mxu1 }
 0x29d   :  { %498 = vst [vmem:[%s1007_s5 + $0x48] sm:$0xff] %v436_v58 }
 0x29e   :  { %v440_v59 = vpop.f32.mrf.mxu1 }
 0x29f   :  { %499 = vst [vmem:[%s1007_s5 + $0x50] sm:$0xff] %v440_v59 }
 0x2a0   :  { %v442_v60 = vpop.f32.mrf.mxu1 }
 0x2a1   :  { %500 = vst [vmem:[%s1007_s5 + $0x58] sm:$0xff] %v442_v60 }
 0x2a2   :  { %v446_v61 = vpop.f32.mrf.mxu1 }
 0x2a3   :  { %501 = vst [vmem:[%s1007_s5 + $0x60] sm:$0xff] %v446_v61 }
 0x2a4   :  { %v448_v62 = vpop.f32.mrf.mxu1 }
 0x2a5   :  { %502 = vst [vmem:[%s1007_s5 + $0x68] sm:$0xff] %v448_v62 }
 0x2a6   :  { %v452_v63 = vpop.f32.mrf.mxu1 }
 0x2a7   :  { %503 = vst [vmem:[%s1007_s5 + $0x70] sm:$0xff] %v452_v63 }
 0x2a8   :  { %v454_v0 = vpop.f32.mrf.mxu1 }
 0x2a9   :  { %504 = vst [vmem:[%s1007_s5 + $0x78] sm:$0xff] %v454_v0 }
 0x2aa   :  { %v458_v1 = vpop.f32.mrf.mxu1 }
 0x2ab   :  { %505 = vst [vmem:[%s1007_s5 + $0xc0] sm:$0xff] %v458_v1 }
 0x2ac   :  { %v460_v2 = vpop.f32.mrf.mxu1 }
 0x2ad   :  { %506 = vst [vmem:[%s1007_s5 + $0xc8] sm:$0xff] %v460_v2 }
 0x2ae   :  { %v464_v3 = vpop.f32.mrf.mxu1 }
 0x2af   :  { %507 = vst [vmem:[%s1007_s5 + $0xd0] sm:$0xff] %v464_v3 }
 0x2b0   :  { %v466_v4 = vpop.f32.mrf.mxu1 }
 0x2b1   :  { %508 = vst [vmem:[%s1007_s5 + $0xd8] sm:$0xff] %v466_v4 }
 0x2b2   :  { %v470_v5 = vpop.f32.mrf.mxu1 }
 0x2b3   :  { %509 = vst [vmem:[%s1007_s5 + $0xe0] sm:$0xff] %v470_v5 }
 0x2b4   :  { %v472_v6 = vpop.f32.mrf.mxu1 }
 0x2b5   :  { %510 = vst [vmem:[%s1007_s5 + $0xe8] sm:$0xff] %v472_v6 }
 0x2b6   :  { %v476_v7 = vpop.f32.mrf.mxu1 }
 0x2b7   :  { %511 = vst [vmem:[%s1007_s5 + $0xf0] sm:$0xff] %v476_v7 }
 0x2b8   :  { %v478_v8 = vpop.f32.mrf.mxu1 }
 0x2b9   :  { %512 = vst [vmem:[%s1007_s5 + $0xf8] sm:$0xff] %v478_v8 }

</bundles_post_ra>
